<compile_context>
chip_gen: v6e
topology: v6e:2x2x1
jax: 0.10.0
libtpu: 0.0.40
codegen_flags: <defaults>
</compile_context>

<pallas_src>
import jax
import jax.numpy as jnp
from jax import lax
from jax.experimental import pallas as pl
from jax.experimental.pallas import tpu as pltpu


def conv2d_block(x_nchw, weight_oihw, bias, *, stride=1, padding=0,
                 norm='none', activation='relu', pad_type='zero',
                 compute_dtype=jnp.bfloat16, out_dtype=None):
    """Forward of Conv2dBlock: activation(conv2d(zero_pad(x)) + bias).

    Implemented: pad_type='zero', norm='none',
    activation in {'relu','lrelu','tanh','none'}, stride=1.
    Pass compute_dtype=jnp.float32 for bit-faithful f32 numerics,
    out_dtype=jnp.bfloat16 to halve output HBM writes.
    """
    n, cin, h, w = x_nchw.shape
    cout, cin_w, kh, kw = weight_oihw.shape
    assert cin == cin_w, (cin, cin_w)

    if pad_type != 'zero':
        # TODO(synk): pad_type='reflect' (ReflectionPad2d) not implemented.
        raise NotImplementedError(f"pad_type={pad_type!r}")
    if norm != 'none':
        # TODO(synk): norm variants ('batch'/'inst'/'ln'/'adain') not implemented.
        raise NotImplementedError(f"norm={norm!r}")
    if activation not in ('relu', 'lrelu', 'tanh', 'none'):
        # TODO(synk): 'prelu' / 'selu' activations not implemented.
        raise NotImplementedError(f"activation={activation!r}")
    if stride != 1:
        # TODO(synk): stride>1 needs per-phase (space-to-depth) tap offsets; not implemented.
        raise NotImplementedError("only stride=1 is implemented")

    odt = x_nchw.dtype if out_dtype is None else out_dtype

    hp, wp = h + 2 * padding, w + 2 * padding
    hout, wout = hp - kh + 1, wp - kw + 1
    m_wide = hout * wp                 # "wide" rows: Wp columns computed, Wout valid
    m_out = hout * wout

    # ---- wrapper glue: ONE cast+pad pass over the input, free reshapes ----------
    # One extra zero row at the bottom keeps the last tap's lane-shifted view in
    # bounds (those elements only feed the discarded wide columns).
    extra_rows = 1 if kw > 1 else 0
    x = x_nchw.astype(compute_dtype)
    x = jnp.pad(x, ((0, 0), (0, 0),
                    (padding, padding + extra_rows), (padding, padding)))
    s_flat = (hp + extra_rows) * wp
    x = x.reshape(n, cin, s_flat)      # NCHW flattened: Cin -> sublanes, H*W -> lanes

    # Weights as (kh*kw, Cout, Cin) so the kernel takes tap t with a plain index.
    w_taps = jnp.transpose(weight_oihw, (2, 3, 0, 1)).reshape(kh * kw, cout, cin)
    w_taps = w_taps.astype(compute_dtype)
    b_col = bias.reshape(cout, 1).astype(jnp.float32)

    # Cout tiling: MXU-aligned 256-wide tiles for big layers (v6e/v7x MXU is 2x256);
    # demo-sized layers use a single tile.
    tcout = 256 if (cout > 256 and cout % 256 == 0) else cout
    n_ct = cout // tcout

    taps = [(i, j) for i in range(kh) for j in range(kw)]

    def kernel(x_ref, w_ref, b_ref, o_ref):
        # x_ref: (1, Cin, S)          per-batch padded image, flat spatial lane dim
        # w_ref: (kh*kw, TCout, Cin)  bf16 tap weights
        # b_ref: (TCout, 1)           f32 bias
        # o_ref: (1, TCout, Hout*Wout)
        acc = None
        for t, (i, j) in enumerate(taps):          # static unroll: kh*kw MXU matmuls
            off = i * wp + j                       # lane shift of the same VMEM block
            xt = x_ref[0, :, off:off + m_wide]     # (Cin, m_wide)
            p = jnp.dot(w_ref[t], xt, preferred_element_type=jnp.float32)
            acc = p if acc is None else acc + p
        acc = acc + b_ref[...]                     # bias (norm='none')
        if activation == 'relu':
            acc = jnp.maximum(acc, 0.0)
        elif activation == 'lrelu':
            acc = jnp.where(acc > 0.0, acc, 0.2 * acc)
        elif activation == 'tanh':
            acc = jnp.tanh(acc)
        acc = acc.astype(o_ref.dtype)
        # Drop the (Wp - Wout) wrap-around columns per row and store N-major,
        # lane-dense, directly in the final layout (no wrapper transpose pass).
        for r in range(hout):                      # static unroll
            o_ref[0, :, r * wout:(r + 1) * wout] = acc[:, r * wp: r * wp + wout]

    # VMEM budget: double-buffered input/weight/bias/output blocks + f32 accumulator.
    # NOTE: weight/bias blocks are grid-invariant when n_ct == 1; pl.Buffered(1)
    # could drop their second buffer (only matters for very large Cout*K).
    # TODO(synk): for very large Cin or images, add row-band / Cin-reduction tiling.
    bpe = jnp.dtype(compute_dtype).itemsize
    need = (2 * cin * s_flat * bpe
            + 2 * kh * kw * tcout * cin * bpe
            + 2 * cout * 4
            + 2 * tcout * m_out * jnp.dtype(odt).itemsize
            + 2 * tcout * m_wide * 4)
    vmem_limit = int(max(32 * 2 ** 20, min(2 * need, 48 * 2 ** 20)))  # 48 MiB cap fits v7x

    out = pl.pallas_call(
        kernel,
        out_shape=jax.ShapeDtypeStruct((n, cout, m_out), odt),
        grid_spec=pltpu.PrefetchScalarGridSpec(
            num_scalar_prefetch=0,
            grid=(n, n_ct),
            in_specs=[
                pl.BlockSpec((1, cin, s_flat), lambda b, c: (b, 0, 0)),       # image (resident across c)
                pl.BlockSpec((kh * kw, tcout, cin), lambda b, c: (0, c, 0)),  # tap weights
                pl.BlockSpec((tcout, 1), lambda b, c: (c, 0)),                # bias
            ],
            out_specs=pl.BlockSpec((1, tcout, m_out), lambda b, c: (b, c, 0)),
        ),
        compiler_params=pltpu.CompilerParams(
            dimension_semantics=("parallel", "parallel"),   # megacore-shardable
            vmem_limit_bytes=vmem_limit,
        ),
    )(x, w_taps, b_col)

    # Free view back to NCHW — no transpose / extra copy pass on the output.
    return out.reshape(n, cout, hout, wout)


if __name__ == "__main__":
    # Conv2dBlock(input_dim=4, output_dim=8, kernel_size=3, stride=1, padding=1,
    #             norm='none', activation='relu', pad_type='zero')
    key = jax.random.PRNGKey(0)
    k_x, k_w, k_b = jax.random.split(key, 3)

    N, CIN, H, W = 2, 4, 16, 16
    COUT, KH, KW = 8, 3, 3
    STRIDE, PAD = 1, 1

    x = jax.random.normal(k_x, (N, CIN, H, W), dtype=jnp.float32)
    weight = jax.random.normal(k_w, (COUT, CIN, KH, KW), dtype=jnp.float32) * 0.1
    bias = jax.random.normal(k_b, (COUT,), dtype=jnp.float32) * 0.1

    out = conv2d_block(x, weight, bias, stride=STRIDE, padding=PAD,
                       norm='none', activation='relu', pad_type='zero')
    out = jax.block_until_ready(out)

    # Reference: zero-pad Conv2d + bias + ReLU on the same bf16-rounded operands
    # (the kernel accumulates in f32, so only summation order differs).
    x_r = x.astype(jnp.bfloat16).astype(jnp.float32)
    w_r = weight.astype(jnp.bfloat16).astype(jnp.float32)
    ref = lax.conv_general_dilated(
        x_r, w_r, window_strides=(STRIDE, STRIDE),
        padding=[(PAD, PAD), (PAD, PAD)],
        dimension_numbers=("NCHW", "OIHW", "NCHW"),
        precision=lax.Precision.HIGHEST,
    ) + bias.reshape(1, COUT, 1, 1)
    ref = jnp.maximum(ref, 0.0)

    assert out.shape == (N, COUT, H, W), out.shape
    err = float(jnp.max(jnp.abs(out - ref)))
    assert jnp.allclose(out, ref, atol=2e-3, rtol=2e-3), err

    print("KERNEL_OK")
</pallas_src>

<mosaic_0001>
module attributes {stable_mosaic.version = 11 : i64} {
  func.func @kernel(%arg0: i32, %arg1: i32, %arg2: memref<1x4x342xbf16, #tpu.memory_space<vmem>>, %arg3: memref<9x8x4xbf16, #tpu.memory_space<vmem>>, %arg4: memref<8x1xf32, #tpu.memory_space<vmem>>, %arg5: memref<1x8x256xf32, #tpu.memory_space<vmem>>) attributes {dimension_semantics = [#tpu.dimension_semantics<parallel>, #tpu.dimension_semantics<parallel>], iteration_bounds = array<i64: 2, 1>, scalar_prefetch = 0 : i64, scratch_operands = 0 : i64, tpu.core_type = #tpu.core_type<tc>, window_params = [{transform_indices = @transform_0, window_bounds = array<i64: 1, 4, 342>}, {transform_indices = @transform_1, window_bounds = array<i64: 9, 8, 4>}, {transform_indices = @transform_2, window_bounds = array<i64: 8, 1>}, {transform_indices = @transform_3, window_bounds = array<i64: 1, 8, 256>}]} {
    %c0 = arith.constant 0 : index
    %c0_0 = arith.constant 0 : index
    %c0_1 = arith.constant 0 : index
    %0 = vector.load %arg2[%c0, %c0_0, %c0_1] : memref<1x4x342xbf16, #tpu.memory_space<vmem>>, vector<1x4x288xbf16>
    %1 = vector.shape_cast %0 : vector<1x4x288xbf16> to vector<4x288xbf16>
    %c0_2 = arith.constant 0 : index
    %c0_3 = arith.constant 0 : index
    %c0_4 = arith.constant 0 : index
    %2 = vector.load %arg3[%c0_2, %c0_3, %c0_4] : memref<9x8x4xbf16, #tpu.memory_space<vmem>>, vector<1x8x4xbf16>
    %3 = vector.shape_cast %2 : vector<1x8x4xbf16> to vector<8x4xbf16>
    %cst = arith.constant dense<0.000000e+00> : vector<8x288xf32>
    %4 = tpu.matmul %3, %1, %cst {dimension_numbers = #tpu.dot_dimension_numbers<[1], [0], [0], [1], [0, 0, 1, 1], [], []>} : vector<8x4xbf16>, vector<4x288xbf16>, vector<8x288xf32> -> vector<8x288xf32>
    %c0_5 = arith.constant 0 : index
    %c0_6 = arith.constant 0 : index
    %c1 = arith.constant 1 : index
    %5 = vector.load %arg2[%c0_5, %c0_6, %c1] : memref<1x4x342xbf16, #tpu.memory_space<vmem>>, vector<1x4x288xbf16>
    %6 = vector.shape_cast %5 : vector<1x4x288xbf16> to vector<4x288xbf16>
    %c1_7 = arith.constant 1 : index
    %c0_8 = arith.constant 0 : index
    %c0_9 = arith.constant 0 : index
    %7 = vector.load %arg3[%c1_7, %c0_8, %c0_9] : memref<9x8x4xbf16, #tpu.memory_space<vmem>>, vector<1x8x4xbf16>
    %8 = vector.shape_cast %7 : vector<1x8x4xbf16> to vector<8x4xbf16>
    %cst_10 = arith.constant dense<0.000000e+00> : vector<8x288xf32>
    %9 = tpu.matmul %8, %6, %cst_10 {dimension_numbers = #tpu.dot_dimension_numbers<[1], [0], [0], [1], [0, 0, 1, 1], [], []>} : vector<8x4xbf16>, vector<4x288xbf16>, vector<8x288xf32> -> vector<8x288xf32>
    %10 = arith.addf %4, %9 : vector<8x288xf32>
    %c0_11 = arith.constant 0 : index
    %c0_12 = arith.constant 0 : index
    %c2 = arith.constant 2 : index
    %11 = vector.load %arg2[%c0_11, %c0_12, %c2] : memref<1x4x342xbf16, #tpu.memory_space<vmem>>, vector<1x4x288xbf16>
    %12 = vector.shape_cast %11 : vector<1x4x288xbf16> to vector<4x288xbf16>
    %c2_13 = arith.constant 2 : index
    %c0_14 = arith.constant 0 : index
    %c0_15 = arith.constant 0 : index
    %13 = vector.load %arg3[%c2_13, %c0_14, %c0_15] : memref<9x8x4xbf16, #tpu.memory_space<vmem>>, vector<1x8x4xbf16>
    %14 = vector.shape_cast %13 : vector<1x8x4xbf16> to vector<8x4xbf16>
    %cst_16 = arith.constant dense<0.000000e+00> : vector<8x288xf32>
    %15 = tpu.matmul %14, %12, %cst_16 {dimension_numbers = #tpu.dot_dimension_numbers<[1], [0], [0], [1], [0, 0, 1, 1], [], []>} : vector<8x4xbf16>, vector<4x288xbf16>, vector<8x288xf32> -> vector<8x288xf32>
    %16 = arith.addf %10, %15 : vector<8x288xf32>
    %c0_17 = arith.constant 0 : index
    %c0_18 = arith.constant 0 : index
    %c18 = arith.constant 18 : index
    %17 = vector.load %arg2[%c0_17, %c0_18, %c18] : memref<1x4x342xbf16, #tpu.memory_space<vmem>>, vector<1x4x288xbf16>
    %18 = vector.shape_cast %17 : vector<1x4x288xbf16> to vector<4x288xbf16>
    %c3 = arith.constant 3 : index
    %c0_19 = arith.constant 0 : index
    %c0_20 = arith.constant 0 : index
    %19 = vector.load %arg3[%c3, %c0_19, %c0_20] : memref<9x8x4xbf16, #tpu.memory_space<vmem>>, vector<1x8x4xbf16>
    %20 = vector.shape_cast %19 : vector<1x8x4xbf16> to vector<8x4xbf16>
    %cst_21 = arith.constant dense<0.000000e+00> : vector<8x288xf32>
    %21 = tpu.matmul %20, %18, %cst_21 {dimension_numbers = #tpu.dot_dimension_numbers<[1], [0], [0], [1], [0, 0, 1, 1], [], []>} : vector<8x4xbf16>, vector<4x288xbf16>, vector<8x288xf32> -> vector<8x288xf32>
    %22 = arith.addf %16, %21 : vector<8x288xf32>
    %c0_22 = arith.constant 0 : index
    %c0_23 = arith.constant 0 : index
    %c19 = arith.constant 19 : index
    %23 = vector.load %arg2[%c0_22, %c0_23, %c19] : memref<1x4x342xbf16, #tpu.memory_space<vmem>>, vector<1x4x288xbf16>
    %24 = vector.shape_cast %23 : vector<1x4x288xbf16> to vector<4x288xbf16>
    %c4 = arith.constant 4 : index
    %c0_24 = arith.constant 0 : index
    %c0_25 = arith.constant 0 : index
    %25 = vector.load %arg3[%c4, %c0_24, %c0_25] : memref<9x8x4xbf16, #tpu.memory_space<vmem>>, vector<1x8x4xbf16>
    %26 = vector.shape_cast %25 : vector<1x8x4xbf16> to vector<8x4xbf16>
    %cst_26 = arith.constant dense<0.000000e+00> : vector<8x288xf32>
    %27 = tpu.matmul %26, %24, %cst_26 {dimension_numbers = #tpu.dot_dimension_numbers<[1], [0], [0], [1], [0, 0, 1, 1], [], []>} : vector<8x4xbf16>, vector<4x288xbf16>, vector<8x288xf32> -> vector<8x288xf32>
    %28 = arith.addf %22, %27 : vector<8x288xf32>
    %c0_27 = arith.constant 0 : index
    %c0_28 = arith.constant 0 : index
    %c20 = arith.constant 20 : index
    %29 = vector.load %arg2[%c0_27, %c0_28, %c20] : memref<1x4x342xbf16, #tpu.memory_space<vmem>>, vector<1x4x288xbf16>
    %30 = vector.shape_cast %29 : vector<1x4x288xbf16> to vector<4x288xbf16>
    %c5 = arith.constant 5 : index
    %c0_29 = arith.constant 0 : index
    %c0_30 = arith.constant 0 : index
    %31 = vector.load %arg3[%c5, %c0_29, %c0_30] : memref<9x8x4xbf16, #tpu.memory_space<vmem>>, vector<1x8x4xbf16>
    %32 = vector.shape_cast %31 : vector<1x8x4xbf16> to vector<8x4xbf16>
    %cst_31 = arith.constant dense<0.000000e+00> : vector<8x288xf32>
    %33 = tpu.matmul %32, %30, %cst_31 {dimension_numbers = #tpu.dot_dimension_numbers<[1], [0], [0], [1], [0, 0, 1, 1], [], []>} : vector<8x4xbf16>, vector<4x288xbf16>, vector<8x288xf32> -> vector<8x288xf32>
    %34 = arith.addf %28, %33 : vector<8x288xf32>
    %c0_32 = arith.constant 0 : index
    %c0_33 = arith.constant 0 : index
    %c36 = arith.constant 36 : index
    %35 = vector.load %arg2[%c0_32, %c0_33, %c36] : memref<1x4x342xbf16, #tpu.memory_space<vmem>>, vector<1x4x288xbf16>
    %36 = vector.shape_cast %35 : vector<1x4x288xbf16> to vector<4x288xbf16>
    %c6 = arith.constant 6 : index
    %c0_34 = arith.constant 0 : index
    %c0_35 = arith.constant 0 : index
    %37 = vector.load %arg3[%c6, %c0_34, %c0_35] : memref<9x8x4xbf16, #tpu.memory_space<vmem>>, vector<1x8x4xbf16>
    %38 = vector.shape_cast %37 : vector<1x8x4xbf16> to vector<8x4xbf16>
    %cst_36 = arith.constant dense<0.000000e+00> : vector<8x288xf32>
    %39 = tpu.matmul %38, %36, %cst_36 {dimension_numbers = #tpu.dot_dimension_numbers<[1], [0], [0], [1], [0, 0, 1, 1], [], []>} : vector<8x4xbf16>, vector<4x288xbf16>, vector<8x288xf32> -> vector<8x288xf32>
    %40 = arith.addf %34, %39 : vector<8x288xf32>
    %c0_37 = arith.constant 0 : index
    %c0_38 = arith.constant 0 : index
    %c37 = arith.constant 37 : index
    %41 = vector.load %arg2[%c0_37, %c0_38, %c37] : memref<1x4x342xbf16, #tpu.memory_space<vmem>>, vector<1x4x288xbf16>
    %42 = vector.shape_cast %41 : vector<1x4x288xbf16> to vector<4x288xbf16>
    %c7 = arith.constant 7 : index
    %c0_39 = arith.constant 0 : index
    %c0_40 = arith.constant 0 : index
    %43 = vector.load %arg3[%c7, %c0_39, %c0_40] : memref<9x8x4xbf16, #tpu.memory_space<vmem>>, vector<1x8x4xbf16>
    %44 = vector.shape_cast %43 : vector<1x8x4xbf16> to vector<8x4xbf16>
    %cst_41 = arith.constant dense<0.000000e+00> : vector<8x288xf32>
    %45 = tpu.matmul %44, %42, %cst_41 {dimension_numbers = #tpu.dot_dimension_numbers<[1], [0], [0], [1], [0, 0, 1, 1], [], []>} : vector<8x4xbf16>, vector<4x288xbf16>, vector<8x288xf32> -> vector<8x288xf32>
    %46 = arith.addf %40, %45 : vector<8x288xf32>
    %c0_42 = arith.constant 0 : index
    %c0_43 = arith.constant 0 : index
    %c38 = arith.constant 38 : index
    %47 = vector.load %arg2[%c0_42, %c0_43, %c38] : memref<1x4x342xbf16, #tpu.memory_space<vmem>>, vector<1x4x288xbf16>
    %48 = vector.shape_cast %47 : vector<1x4x288xbf16> to vector<4x288xbf16>
    %c8 = arith.constant 8 : index
    %c0_44 = arith.constant 0 : index
    %c0_45 = arith.constant 0 : index
    %49 = vector.load %arg3[%c8, %c0_44, %c0_45] : memref<9x8x4xbf16, #tpu.memory_space<vmem>>, vector<1x8x4xbf16>
    %50 = vector.shape_cast %49 : vector<1x8x4xbf16> to vector<8x4xbf16>
    %cst_46 = arith.constant dense<0.000000e+00> : vector<8x288xf32>
    %51 = tpu.matmul %50, %48, %cst_46 {dimension_numbers = #tpu.dot_dimension_numbers<[1], [0], [0], [1], [0, 0, 1, 1], [], []>} : vector<8x4xbf16>, vector<4x288xbf16>, vector<8x288xf32> -> vector<8x288xf32>
    %52 = arith.addf %46, %51 : vector<8x288xf32>
    %c0_47 = arith.constant 0 : index
    %c0_48 = arith.constant 0 : index
    %53 = vector.load %arg4[%c0_47, %c0_48] : memref<8x1xf32, #tpu.memory_space<vmem>>, vector<8x1xf32>
    %54 = vector.broadcast %53 : vector<8x1xf32> to vector<8x288xf32>
    %55 = arith.addf %52, %54 : vector<8x288xf32>
    %cst_49 = arith.constant 0.000000e+00 : f32
    %56 = vector.broadcast %cst_49 : f32 to vector<8x288xf32>
    %57 = arith.maximumf %55, %56 : vector<8x288xf32>
    %58 = vector.extract_strided_slice %57 {offsets = [0, 0], sizes = [8, 16], strides = [1, 1]} : vector<8x288xf32> to vector<8x16xf32>
    %c0_50 = arith.constant 0 : index
    %c0_51 = arith.constant 0 : index
    %c0_52 = arith.constant 0 : index
    %59 = vector.load %arg5[%c0_50, %c0_51, %c0_52] : memref<1x8x256xf32, #tpu.memory_space<vmem>>, vector<1x8x16xf32>
    %60 = vector.shape_cast %59 : vector<1x8x16xf32> to vector<8x16xf32>
    %61 = vector.shape_cast %58 : vector<8x16xf32> to vector<1x8x16xf32>
    tpu.vector_store %arg5[%c0_50, %c0_51, %c0_52], %61 {strides = array<i32>} : memref<1x8x256xf32, #tpu.memory_space<vmem>>, vector<1x8x16xf32>,
    %62 = vector.extract_strided_slice %57 {offsets = [0, 18], sizes = [8, 16], strides = [1, 1]} : vector<8x288xf32> to vector<8x16xf32>
    %c0_53 = arith.constant 0 : index
    %c0_54 = arith.constant 0 : index
    %c16 = arith.constant 16 : index
    %63 = vector.load %arg5[%c0_53, %c0_54, %c16] : memref<1x8x256xf32, #tpu.memory_space<vmem>>, vector<1x8x16xf32>
    %64 = vector.shape_cast %63 : vector<1x8x16xf32> to vector<8x16xf32>
    %65 = vector.shape_cast %62 : vector<8x16xf32> to vector<1x8x16xf32>
    tpu.vector_store %arg5[%c0_53, %c0_54, %c16], %65 {strides = array<i32>} : memref<1x8x256xf32, #tpu.memory_space<vmem>>, vector<1x8x16xf32>,
    %66 = vector.extract_strided_slice %57 {offsets = [0, 36], sizes = [8, 16], strides = [1, 1]} : vector<8x288xf32> to vector<8x16xf32>
    %c0_55 = arith.constant 0 : index
    %c0_56 = arith.constant 0 : index
    %c32 = arith.constant 32 : index
    %67 = vector.load %arg5[%c0_55, %c0_56, %c32] : memref<1x8x256xf32, #tpu.memory_space<vmem>>, vector<1x8x16xf32>
    %68 = vector.shape_cast %67 : vector<1x8x16xf32> to vector<8x16xf32>
    %69 = vector.shape_cast %66 : vector<8x16xf32> to vector<1x8x16xf32>
    tpu.vector_store %arg5[%c0_55, %c0_56, %c32], %69 {strides = array<i32>} : memref<1x8x256xf32, #tpu.memory_space<vmem>>, vector<1x8x16xf32>,
    %70 = vector.extract_strided_slice %57 {offsets = [0, 54], sizes = [8, 16], strides = [1, 1]} : vector<8x288xf32> to vector<8x16xf32>
    %c0_57 = arith.constant 0 : index
    %c0_58 = arith.constant 0 : index
    %c48 = arith.constant 48 : index
    %71 = vector.load %arg5[%c0_57, %c0_58, %c48] : memref<1x8x256xf32, #tpu.memory_space<vmem>>, vector<1x8x16xf32>
    %72 = vector.shape_cast %71 : vector<1x8x16xf32> to vector<8x16xf32>
    %73 = vector.shape_cast %70 : vector<8x16xf32> to vector<1x8x16xf32>
    tpu.vector_store %arg5[%c0_57, %c0_58, %c48], %73 {strides = array<i32>} : memref<1x8x256xf32, #tpu.memory_space<vmem>>, vector<1x8x16xf32>,
    %74 = vector.extract_strided_slice %57 {offsets = [0, 72], sizes = [8, 16], strides = [1, 1]} : vector<8x288xf32> to vector<8x16xf32>
    %c0_59 = arith.constant 0 : index
    %c0_60 = arith.constant 0 : index
    %c64 = arith.constant 64 : index
    %75 = vector.load %arg5[%c0_59, %c0_60, %c64] : memref<1x8x256xf32, #tpu.memory_space<vmem>>, vector<1x8x16xf32>
    %76 = vector.shape_cast %75 : vector<1x8x16xf32> to vector<8x16xf32>
    %77 = vector.shape_cast %74 : vector<8x16xf32> to vector<1x8x16xf32>
    tpu.vector_store %arg5[%c0_59, %c0_60, %c64], %77 {strides = array<i32>} : memref<1x8x256xf32, #tpu.memory_space<vmem>>, vector<1x8x16xf32>,
    %78 = vector.extract_strided_slice %57 {offsets = [0, 90], sizes = [8, 16], strides = [1, 1]} : vector<8x288xf32> to vector<8x16xf32>
    %c0_61 = arith.constant 0 : index
    %c0_62 = arith.constant 0 : index
    %c80 = arith.constant 80 : index
    %79 = vector.load %arg5[%c0_61, %c0_62, %c80] : memref<1x8x256xf32, #tpu.memory_space<vmem>>, vector<1x8x16xf32>
    %80 = vector.shape_cast %79 : vector<1x8x16xf32> to vector<8x16xf32>
    %81 = vector.shape_cast %78 : vector<8x16xf32> to vector<1x8x16xf32>
    tpu.vector_store %arg5[%c0_61, %c0_62, %c80], %81 {strides = array<i32>} : memref<1x8x256xf32, #tpu.memory_space<vmem>>, vector<1x8x16xf32>,
    %82 = vector.extract_strided_slice %57 {offsets = [0, 108], sizes = [8, 16], strides = [1, 1]} : vector<8x288xf32> to vector<8x16xf32>
    %c0_63 = arith.constant 0 : index
    %c0_64 = arith.constant 0 : index
    %c96 = arith.constant 96 : index
    %83 = vector.load %arg5[%c0_63, %c0_64, %c96] : memref<1x8x256xf32, #tpu.memory_space<vmem>>, vector<1x8x16xf32>
    %84 = vector.shape_cast %83 : vector<1x8x16xf32> to vector<8x16xf32>
    %85 = vector.shape_cast %82 : vector<8x16xf32> to vector<1x8x16xf32>
    tpu.vector_store %arg5[%c0_63, %c0_64, %c96], %85 {strides = array<i32>} : memref<1x8x256xf32, #tpu.memory_space<vmem>>, vector<1x8x16xf32>,
    %86 = vector.extract_strided_slice %57 {offsets = [0, 126], sizes = [8, 16], strides = [1, 1]} : vector<8x288xf32> to vector<8x16xf32>
    %c0_65 = arith.constant 0 : index
    %c0_66 = arith.constant 0 : index
    %c112 = arith.constant 112 : index
    %87 = vector.load %arg5[%c0_65, %c0_66, %c112] : memref<1x8x256xf32, #tpu.memory_space<vmem>>, vector<1x8x16xf32>
    %88 = vector.shape_cast %87 : vector<1x8x16xf32> to vector<8x16xf32>
    %89 = vector.shape_cast %86 : vector<8x16xf32> to vector<1x8x16xf32>
    tpu.vector_store %arg5[%c0_65, %c0_66, %c112], %89 {strides = array<i32>} : memref<1x8x256xf32, #tpu.memory_space<vmem>>, vector<1x8x16xf32>,
    %90 = vector.extract_strided_slice %57 {offsets = [0, 144], sizes = [8, 16], strides = [1, 1]} : vector<8x288xf32> to vector<8x16xf32>
    %c0_67 = arith.constant 0 : index
    %c0_68 = arith.constant 0 : index
    %c128 = arith.constant 128 : index
    %91 = vector.load %arg5[%c0_67, %c0_68, %c128] : memref<1x8x256xf32, #tpu.memory_space<vmem>>, vector<1x8x16xf32>
    %92 = vector.shape_cast %91 : vector<1x8x16xf32> to vector<8x16xf32>
    %93 = vector.shape_cast %90 : vector<8x16xf32> to vector<1x8x16xf32>
    tpu.vector_store %arg5[%c0_67, %c0_68, %c128], %93 {strides = array<i32>} : memref<1x8x256xf32, #tpu.memory_space<vmem>>, vector<1x8x16xf32>,
    %94 = vector.extract_strided_slice %57 {offsets = [0, 162], sizes = [8, 16], strides = [1, 1]} : vector<8x288xf32> to vector<8x16xf32>
    %c0_69 = arith.constant 0 : index
    %c0_70 = arith.constant 0 : index
    %c144 = arith.constant 144 : index
    %95 = vector.load %arg5[%c0_69, %c0_70, %c144] : memref<1x8x256xf32, #tpu.memory_space<vmem>>, vector<1x8x16xf32>
    %96 = vector.shape_cast %95 : vector<1x8x16xf32> to vector<8x16xf32>
    %97 = vector.shape_cast %94 : vector<8x16xf32> to vector<1x8x16xf32>
    tpu.vector_store %arg5[%c0_69, %c0_70, %c144], %97 {strides = array<i32>} : memref<1x8x256xf32, #tpu.memory_space<vmem>>, vector<1x8x16xf32>,
    %98 = vector.extract_strided_slice %57 {offsets = [0, 180], sizes = [8, 16], strides = [1, 1]} : vector<8x288xf32> to vector<8x16xf32>
    %c0_71 = arith.constant 0 : index
    %c0_72 = arith.constant 0 : index
    %c160 = arith.constant 160 : index
    %99 = vector.load %arg5[%c0_71, %c0_72, %c160] : memref<1x8x256xf32, #tpu.memory_space<vmem>>, vector<1x8x16xf32>
    %100 = vector.shape_cast %99 : vector<1x8x16xf32> to vector<8x16xf32>
    %101 = vector.shape_cast %98 : vector<8x16xf32> to vector<1x8x16xf32>
    tpu.vector_store %arg5[%c0_71, %c0_72, %c160], %101 {strides = array<i32>} : memref<1x8x256xf32, #tpu.memory_space<vmem>>, vector<1x8x16xf32>,
    %102 = vector.extract_strided_slice %57 {offsets = [0, 198], sizes = [8, 16], strides = [1, 1]} : vector<8x288xf32> to vector<8x16xf32>
    %c0_73 = arith.constant 0 : index
    %c0_74 = arith.constant 0 : index
    %c176 = arith.constant 176 : index
    %103 = vector.load %arg5[%c0_73, %c0_74, %c176] : memref<1x8x256xf32, #tpu.memory_space<vmem>>, vector<1x8x16xf32>
    %104 = vector.shape_cast %103 : vector<1x8x16xf32> to vector<8x16xf32>
    %105 = vector.shape_cast %102 : vector<8x16xf32> to vector<1x8x16xf32>
    tpu.vector_store %arg5[%c0_73, %c0_74, %c176], %105 {strides = array<i32>} : memref<1x8x256xf32, #tpu.memory_space<vmem>>, vector<1x8x16xf32>,
    %106 = vector.extract_strided_slice %57 {offsets = [0, 216], sizes = [8, 16], strides = [1, 1]} : vector<8x288xf32> to vector<8x16xf32>
    %c0_75 = arith.constant 0 : index
    %c0_76 = arith.constant 0 : index
    %c192 = arith.constant 192 : index
    %107 = vector.load %arg5[%c0_75, %c0_76, %c192] : memref<1x8x256xf32, #tpu.memory_space<vmem>>, vector<1x8x16xf32>
    %108 = vector.shape_cast %107 : vector<1x8x16xf32> to vector<8x16xf32>
    %109 = vector.shape_cast %106 : vector<8x16xf32> to vector<1x8x16xf32>
    tpu.vector_store %arg5[%c0_75, %c0_76, %c192], %109 {strides = array<i32>} : memref<1x8x256xf32, #tpu.memory_space<vmem>>, vector<1x8x16xf32>,
    %110 = vector.extract_strided_slice %57 {offsets = [0, 234], sizes = [8, 16], strides = [1, 1]} : vector<8x288xf32> to vector<8x16xf32>
    %c0_77 = arith.constant 0 : index
    %c0_78 = arith.constant 0 : index
    %c208 = arith.constant 208 : index
    %111 = vector.load %arg5[%c0_77, %c0_78, %c208] : memref<1x8x256xf32, #tpu.memory_space<vmem>>, vector<1x8x16xf32>
    %112 = vector.shape_cast %111 : vector<1x8x16xf32> to vector<8x16xf32>
    %113 = vector.shape_cast %110 : vector<8x16xf32> to vector<1x8x16xf32>
    tpu.vector_store %arg5[%c0_77, %c0_78, %c208], %113 {strides = array<i32>} : memref<1x8x256xf32, #tpu.memory_space<vmem>>, vector<1x8x16xf32>,
    %114 = vector.extract_strided_slice %57 {offsets = [0, 252], sizes = [8, 16], strides = [1, 1]} : vector<8x288xf32> to vector<8x16xf32>
    %c0_79 = arith.constant 0 : index
    %c0_80 = arith.constant 0 : index
    %c224 = arith.constant 224 : index
    %115 = vector.load %arg5[%c0_79, %c0_80, %c224] : memref<1x8x256xf32, #tpu.memory_space<vmem>>, vector<1x8x16xf32>
    %116 = vector.shape_cast %115 : vector<1x8x16xf32> to vector<8x16xf32>
    %117 = vector.shape_cast %114 : vector<8x16xf32> to vector<1x8x16xf32>
    tpu.vector_store %arg5[%c0_79, %c0_80, %c224], %117 {strides = array<i32>} : memref<1x8x256xf32, #tpu.memory_space<vmem>>, vector<1x8x16xf32>,
    %118 = vector.extract_strided_slice %57 {offsets = [0, 270], sizes = [8, 16], strides = [1, 1]} : vector<8x288xf32> to vector<8x16xf32>
    %c0_81 = arith.constant 0 : index
    %c0_82 = arith.constant 0 : index
    %c240 = arith.constant 240 : index
    %119 = vector.load %arg5[%c0_81, %c0_82, %c240] : memref<1x8x256xf32, #tpu.memory_space<vmem>>, vector<1x8x16xf32>
    %120 = vector.shape_cast %119 : vector<1x8x16xf32> to vector<8x16xf32>
    %121 = vector.shape_cast %118 : vector<8x16xf32> to vector<1x8x16xf32>
    tpu.vector_store %arg5[%c0_81, %c0_82, %c240], %121 {strides = array<i32>} : memref<1x8x256xf32, #tpu.memory_space<vmem>>, vector<1x8x16xf32>,
    return
  }
  func.func @transform_0(%arg0: i32, %arg1: i32) -> (i32, i32, i32) {
    %c0_i32 = arith.constant 0 : i32
    %c0_i32_0 = arith.constant 0 : i32
    %c0_i32_1 = arith.constant 0 : i32
    return %arg0, %c0_i32, %c0_i32_0 : i32, i32, i32
  }
  func.func @transform_1(%arg0: i32, %arg1: i32) -> (i32, i32, i32) {
    %c0_i32 = arith.constant 0 : i32
    %c0_i32_0 = arith.constant 0 : i32
    %c0_i32_1 = arith.constant 0 : i32
    return %c0_i32, %arg1, %c0_i32_0 : i32, i32, i32
  }
  func.func @transform_2(%arg0: i32, %arg1: i32) -> (i32, i32) {
    %c0_i32 = arith.constant 0 : i32
    %c0_i32_0 = arith.constant 0 : i32
    return %arg1, %c0_i32 : i32, i32
  }
  func.func @transform_3(%arg0: i32, %arg1: i32) -> (i32, i32, i32) {
    %c0_i32 = arith.constant 0 : i32
    %c0_i32_0 = arith.constant 0 : i32
    return %arg0, %arg1, %c0_i32 : i32, i32, i32
  }
}

</mosaic_0001>

<bundles_post_ra>
// kernel: tpu_custom_call.1
= control target key start
LH: loop header
LB: loop body
LE: loop exit
PB: predicated region body
PF: predicated region fallthrough
CT: control target
= control target key end

     0   :  { %8 = vsyncpa [#allocation3], 0  ;;  %s2166_s0 = inlined_call_operand.vmem [shape: bf16[2,4,342], index: 0, kind: input, shape index: {}]   ;;  %s2167_s1 = inlined_call_operand.vmem [shape: bf16[9,8,4], index: 1, kind: input, shape index: {}]   ;;  %s2168_s2 = inlined_call_operand.vmem [shape: f32[8,1], index: 2, kind: input, shape index: {}]   ;;  %s2169_s3 = inlined_call_operand.hbm [shape: f32[2,8,256], index: 3, kind: output, shape index: {}]  }
   0x1   :  { %10 = vsyncpa [#allocation3 + $0x1], 0  ;;  %s1854_s12 = smov 0   ;;  %s1856_s13 = smov 0  }
   0x2   :  { %s1858_s14 = smov 0   ;;  %s1860_s15 = smov 0  }
   0x3   :  { %s1862_s16 = smov 0   ;;  %s1864_s17 = smov 0  }
   0x4 LB: > { %s1520_s18 = sadd.s32 4294967295, %s1807_s17   ;;  %s1521_s19 = sadd.s32 4294967294, %s1807_s17   ;;  %s1807_s17 = sphi %s1864_s17, %s16_s17   ;;  %s1803_s16 = sphi %s1862_s16, %s2176_s16   ;;  %s1799_s15 = sphi %s1860_s15, %s2175_s15   ;;  %s1795_s14 = sphi %s1858_s14, %s2174_s14   ;;  %s1791_s13 = sphi %s1856_s13, %s2173_s13   ;;  %s1787_s12 = sphi %s1854_s12, %s2172_s12  }
   0x5   : > { %s28_s20 = sadd.s32 1, %s1803_s16  ;;  %s115_s21 = sadd.s32 1, %s1795_s14 }
   0x6   : > { %p30_p0 = scmp.ge.s32.totalorder %s28_s20, 2  ;;  %p125_p1 = scmp.ne.s32.totalorder %s1795_s14, %s1791_s13 }
   0x7   : > { %p126_p2 = scmp.eq.s32.totalorder %s1520_s18, 1  ;;  %p131_p3 = scmp.ne.s32.totalorder %s1791_s13, %s1787_s12 }
   0x8   : > { %s2178_s20 = smov (%p30_p0, %s28_s20), 0  ;;  %p132_p5 = scmp.eq.s32.totalorder %s1521_s19, 1 }
   0x9   : > { %p1894_p4 = por %p126_p2, %p125_p1  ;;  %s110_s23 = ssub.s32 %s1803_s16, %s2178_s20 }
   0xa   : > { %p1526_p6 = scmp.ge.s32.totalorder %s1807_s17, 1  ;;  %p113_p7 = scmp.eq.s32.totalorder %s110_s23, 0 }
   0xb   : > { %p1901_p8 = por %p132_p5, %p131_p3  ;;  %p172_p9 = scmp.lt.s32.totalorder %s1807_s17, 3 }
   0xc   : > { %s1907_s25 = scalar_select %p113_p7, %s1795_s14, %s115_s21  }
   0xd   : > { %p173_p10 = pnand %p1526_p6, %p172_p9 }
   0xe   : > { %p204_p11 = scmp.lt.s32.totalorder (!%p173_p10), %s1799_s15, 1  ;;  %s1813_s4 = smov (!%p173_p10), 127  }
   0xf   : > { %176 = sbr.rel (%p173_p10) target bundleno = 577 (0x241), region = 32  ;;  %s1814_s5 = smov (!%p173_p10), 126  }
  0x10   : > { %s1815_s6 = smov (!%p173_p10), 110   ;;  %s1816_s7 = smov (!%p173_p10), 109  }
  0x11   : > { %s1817_s8 = smov (!%p173_p10), 108   ;;  %s1818_s9 = smov (!%p173_p10), 92  }
  0x12   : > { %s1819_s10 = smov (!%p173_p10), 91   ;;  %s1820_s11 = smov (!%p173_p10), 90  }
  0x13   : > { %s201_s28 = sand.u32 (!%p173_p10), 1, %s1791_s13   ;;  %s1826_s18 = smov (!%p173_p10), 106  }
  0x14   : > { %v227_v0 = vlaneseq  ;;  %v1809_v1 = vmov 1983009808   ;;  %v1810_v3 = vmov 0.0   ;;  %s205_s26 = scalar_select %p204_p11, %s1799_s15, 1  ;;  %vm1811_vm0 = vmmov 0   ;;  %v1311_v48 = vld [vmem:[%s2168_s2] sm:$0xff] }
  0x15   : > { %v225_v2 = vunpack.c.l.s4 %v1809_v1  ;;  %1588 = vmatprep.subr.bf16.mxu1 %v1810_v3  ;;  %1590 = vmatprep.mubr.msk.bf16.mxu1 %vm1811_vm0, %v1810_v3  ;;  %v1812_v6 = vmov 0   ;;  %vm252_vm1 = vcmask 1041408   ;;  %vm245_vm2 = vcmask 1039360   ;;  %v1529_v53 = vld [vmem:[%s2167_s1 + $0x4] sm:$0xf]  ;;  %s1527_s29 = sshll.u32 %s201_s28, 4 }
  0x16   : > { %v228_v4 = vshrl.u32 %v227_v0, 7  ;;  %s1642_s27 = smul.u32 6, %s205_s26  ;;  %294 = vmatprep.mubr.bf16.mxu0 %v1812_v6  ;;  %1722 = vset.pattern.permute.xlu0 %v1812_v6  ;;  %vm248_vm3 = vcmask 31744   ;;  %vm462_vm4 = vcmask 1031168   ;;  %v219_v63 = vld [vmem:[%s2167_s1] sm:$0xf] }
  0x17   : > { %v226_v5 = vunpack.c.0.s8 %v225_v2  ;;  %vm587_vm5 = vcmask 900096   ;;  %vm712_vm6 = vcmask 891904   ;;  %vm837_vm7 = vcmask 883712   ;;  %s1828_s19 = smov 104   ;;  %s1829_s21 = smov 116  }
  0x18   : > { %s1921_s30 = scalar_lea.vmem %s2166_s0, %s1642_s27  ;;  %vm962_vm8 = vcmask 752640   ;;  %vm1087_vm9 = vcmask 744448   ;;  %vm1212_vm10 = vcmask 736256   ;;  %vm1323_vm11 = vcmask 130048   ;;  %s1830_s23 = smov 102  }
  0x19   : > { %v1916_v7 = vsub.s32 %v226_v5, %v228_v4  ;;  %v218_v8 = vld [vmem:[%s1921_s30] sm:$0x3f]  ;;  %s1831_s26 = smov 112   ;;  %vm1329_vm12 = vcmask 261248   ;;  %vm1334_vm13 = vcmask 392448   ;;  %vm1339_vm14 = vcmask 523648  }
  0x1a   : > { %v223_v10 = vcombine.high %v218_v8, %v218_v8  ;;  %v436_v11 = vld [vmem:[%s1921_s30] sm:$0x3f]  ;;  %vm1344_vm15 = vcmask 654848  }
  0x1b   : > { %v1925_v9 = vrot.slane %v218_v8, %v1916_v7  ;;  %v447_v14 = vrot.slane %v436_v11, %v1916_v7  ;;  %v440_v15 = vcombine.high %v436_v11, %v436_v11  ;;  %v561_v17 = vld [vmem:[%s1921_s30] sm:$0x3f] }
  0x1c   : > { %v1930_v12 = vrot.slane %v223_v10, %v1916_v7  ;;  %v572_v19 = vrot.slane %v561_v17, %v1916_v7  ;;  %v565_v20 = vcombine.high %v561_v17, %v561_v17  ;;  %v686_v22 = vld [vmem:[%s1921_s30] sm:$0x3f]  ;;  %v1536_v10 = vld [vmem:[%s2167_s1 + $0x8] sm:$0xf] }
  0x1d   : > { %239 = vrot.lane.b32.xlu0 %v1925_v9, %s1813_s4  ;;  %v1934_v13 = vcombine.high %v1925_v9, %v1925_v9  ;;  %v455_v16 = vcombine.high %v447_v14, %v447_v14  ;;  %v454_v18 = vrot.slane %v440_v15, %v1916_v7  ;;  %v697_v24 = vrot.slane %v686_v22, %v1916_v7  ;;  %v811_v27 = vld [vmem:[%s1921_s30] sm:$0x3f] }
  0x1e   : > { %243 = vrot.lane.b32.xlu1 %v1930_v12, %s1813_s4  ;;  %v580_v21 = vcombine.high %v572_v19, %v572_v19  ;;  %v579_v23 = vrot.slane %v565_v20, %v1916_v7  ;;  %v690_v25 = vcombine.high %v686_v22, %v686_v22  ;;  %v822_v29 = vrot.slane %v811_v27, %v1916_v7  ;;  %v936_v32 = vld [vmem:[%s1921_s30] sm:$0x3f] }
  0x1f   : > { %v705_v26 = vcombine.high %v697_v24, %v697_v24  ;;  %v815_v30 = vcombine.high %v811_v27, %v811_v27  ;;  %v947_v34 = vrot.slane %v936_v32, %v1916_v7  ;;  %v940_v35 = vcombine.high %v936_v32, %v936_v32  ;;  %v1061_v37 = vld [vmem:[%s1921_s30] sm:$0x3f]  ;;  %v1544_v27 = vld [vmem:[%s2167_s1 + $0x10] sm:$0xf] }
  0x20   : > { %v704_v28 = vrot.slane %v690_v25, %v1916_v7  ;;  %v830_v31 = vcombine.high %v822_v29, %v822_v29  ;;  %v1072_v39 = vrot.slane %v1061_v37, %v1916_v7  ;;  %v1065_v40 = vcombine.high %v1061_v37, %v1061_v37  ;;  %v1186_v42 = vld [vmem:[%s1921_s30] sm:$0x3f]  ;;  %s1821_s30 = smov 100  }
  0x21   : > { %241 = vrot.lane.b32.xlu0 %v1934_v13, %s1813_s4  ;;  %v829_v33 = vrot.slane %v815_v30, %v1916_v7  ;;  %v955_v36 = vcombine.high %v947_v34, %v947_v34  ;;  %v954_v38 = vrot.slane %v940_v35, %v1916_v7  ;;  %v1197_v44 = vrot.slane %v1186_v42, %v1916_v7  ;;  %v1548_v35 = vld [vmem:[%s2167_s1 + $0x14] sm:$0xf]  ;;  %s2084_s4 = scalar_lea.vmem [#allocation2], %s1527_s29 }
  0x22   : > { %456 = vrot.lane.b32.xlu1 %v447_v14, %s1814_s5  ;;  %v1080_v41 = vcombine.high %v1072_v39, %v1072_v39  ;;  %v1079_v43 = vrot.slane %v1065_v40, %v1916_v7  ;;  %v1190_v45 = vcombine.high %v1186_v42, %v1186_v42  ;;  %v353_v56 = vsel %vm252_vm1, %v1930_v12, 0  ;;  %v1552_v42 = vld [vmem:[%s2167_s1 + $0x18] sm:$0xf]  ;;  %s1420_s27 = sshll.u32 %s2084_s4, 4  ;;  %s1421_s27 = int_to_ptr.vmem [resolvable:$true] %s1420_s27 }
  0x23   : > { %v1205_v46 = vcombine.high %v1197_v44, %v1197_v44  ;;  %v347_v59 = vsel %vm252_vm1, %v1925_v9, 0 }
  0x24   : > { %v1204_v47 = vrot.slane %v1190_v45, %v1916_v7 }
  0x25   : > { %458 = vrot.lane.b32.xlu0 %v455_v16, %s1814_s5 }
  0x26   : > { %460 = vrot.lane.b32.xlu1 %v454_v18, %s1814_s5 }
  0x29   : > { %581 = vrot.lane.b32.xlu0 %v572_v19, %s1815_s6  ;;  %v1540_v19 = vld [vmem:[%s2167_s1 + $0xc] sm:$0xf] }
  0x2a   : > { %583 = vrot.lane.b32.xlu1 %v580_v21, %s1815_s6 }
  0x2d   : > { %585 = vrot.lane.b32.xlu0 %v579_v23, %s1815_s6 }
  0x2e   : > { %706 = vrot.lane.b32.xlu1 %v697_v24, %s1816_s7 }
  0x31   : > { %708 = vrot.lane.b32.xlu0 %v705_v26, %s1816_s7 }
  0x32   : > { %710 = vrot.lane.b32.xlu1 %v704_v28, %s1816_s7  ;;  %s1822_s7 = smov 114  }
  0x35   : > { %831 = vrot.lane.b32.xlu0 %v822_v29, %s1817_s8 }
  0x36   : > { %833 = vrot.lane.b32.xlu1 %v830_v31, %s1817_s8 }
  0x39   : > { %835 = vrot.lane.b32.xlu0 %v829_v33, %s1817_s8 }
  0x3a   : > { %956 = vrot.lane.b32.xlu1 %v947_v34, %s1818_s9 }
  0x3d   : > { %958 = vrot.lane.b32.xlu0 %v955_v36, %s1818_s9 }
  0x3e   : > { %960 = vrot.lane.b32.xlu1 %v954_v38, %s1818_s9  ;;  %s1823_s9 = smov 124  }
  0x41   : > { %1081 = vrot.lane.b32.xlu0 %v1072_v39, %s1819_s10 }
  0x42   : > { %1083 = vrot.lane.b32.xlu1 %v1080_v41, %s1819_s10 }
  0x45   : > { %1085 = vrot.lane.b32.xlu0 %v1079_v43, %s1819_s10  ;;  %s1824_s10 = smov 122  }
  0x46   : > { %1206 = vrot.lane.b32.xlu1 %v1197_v44, %s1820_s11 }
  0x49   : > { %1208 = vrot.lane.b32.xlu0 %v1205_v46, %s1820_s11 }
  0x4a   : > { %1210 = vrot.lane.b32.xlu1 %v1204_v47, %s1820_s11  ;;  %s1825_s11 = smov 120  }
  0x4d   : > { %1314 = vperm.xlu0 %1722, %v1311_v48  }
  0x8f   : > { %v240_v49 = vpop.permute.xlu0 %239 }
  0x90   : > { %v244_v50 = vpop.permute.xlu1 %243 }
  0x91   : > { %v260_v51 = vsel %vm252_vm1, %v244_v50, 0 }
  0x92   : > { %1589 = vmatpush3.bf16.msra.mxu1 %v260_v51 }
  0x93   : > { %v242_v52 = vpop.permute.xlu0 %241  ;;  %1594 = vmatprep.subr.bf16.mxu1 %v1810_v3 }
  0x94   : > { %v247_v54 = vsel %vm245_vm2, %v242_v52, %v244_v50  ;;  %v246_v55 = vsel %vm245_vm2, %v240_v49, %v242_v52  ;;  %v457_v58 = vpop.permute.xlu1 %456  ;;  %v1556_v49 = vld [vmem:[%s2167_s1 + $0x1c] sm:$0xf]  ;;  %vm1395_vm2 = vcmask 818176  }
  0x95   : > { %1530 = vmatprep.subr.msk.bf16.mxu0 %vm252_vm1, %v247_v54  ;;  %v254_v57 = vsel %vm252_vm1, %v246_v55, 0  ;;  %1591 = vmatmul.mubr.msk.bf16.vlgmr.msra.gmra.mxu1 %vm248_vm3, %v1529_v53 }
  0x96   : > { %277 = vmatpush1.bf16.msra.mxu0 %v254_v57  ;;  %1595 = vmatpush3.bf16.msra.mxu1 %v353_v56 }
  0x97   : > { %1533 = vmatprep.subr.msk.bf16.mxu0 %vm252_vm1, %v1934_v13  ;;  %v459_v60 = vpop.permute.xlu0 %458  ;;  %1596 = vmatprep.mubr.msk.bf16.mxu1 %vm1811_vm0, %v1810_v3 }
  0x98   : > { %1600 = vmatprep.subr.bf16.mxu1 %v1810_v3  ;;  %v461_v61 = vpop.permute.xlu1 %460  ;;  %v463_v1 = vsel %vm462_vm4, %v457_v58, %v459_v60 }
  0x99   : > { %1531 = vmatmul.mubr.msk.bf16.vlgmr.msra.gmra.mxu0 %vm248_vm3, %v1529_v53  ;;  %v464_v62 = vsel %vm462_vm4, %v459_v60, %v461_v61  ;;  %v475_v2 = vsel %vm252_vm1, %v461_v61, 0  ;;  %v469_v5 = vsel %vm252_vm1, %v463_v1, 0  ;;  %v1560_v53 = vld [vmem:[%s2167_s1 + $0x20] sm:$0xf]  ;;  %vm1361_vm4 = vcmask 932864  }
  0x9a   : > { %370 = vmatpush1.bf16.msra.mxu0 %v347_v59  ;;  %387 = vmatprep.mubr.bf16.mxu0 %v1812_v6 }
  0x9b   : > { %1537 = vmatprep.subr.msk.bf16.mxu0 %vm252_vm1, %v464_v62  ;;  %v582_v0 = vpop.permute.xlu0 %581 }
  0x9c   : > { %v584_v4 = vpop.permute.xlu1 %583 }
  0x9d   : > { %1597 = vmatmul.mubr.msk.bf16.vlgmr.msra.gmra.mxu1 %vm248_vm3, %v219_v63  ;;  %v588_v12 = vsel %vm587_vm5, %v582_v0, %v584_v4 }
  0x9e   : > { %1601 = vmatpush3.bf16.msra.mxu1 %v475_v2  ;;  %1602 = vmatprep.mubr.msk.bf16.mxu1 %vm1811_vm0, %v1810_v3  ;;  %v594_v15 = vsel %vm252_vm1, %v588_v12, 0 }
  0x9f   : > { %v586_v7 = vpop.permute.xlu0 %585  ;;  %1606 = vmatprep.subr.bf16.mxu1 %v1810_v3 }
  0xa0   : > { %v589_v8 = vsel %vm587_vm5, %v584_v4, %v586_v7  ;;  %v707_v9 = vpop.permute.xlu1 %706  ;;  %v600_v13 = vsel %vm252_vm1, %v586_v7, 0 }
  0xa1   : > { %1534 = vmatmul.mubr.msk.bf16.vlgmr.msra.gmra.mxu0 %vm248_vm3, %v219_v63 }
  0xa2   : > { %492 = vmatpush1.bf16.msra.mxu0 %v469_v5  ;;  %509 = vmatprep.mubr.bf16.mxu0 %v1812_v6 }
  0xa3   : > { %1541 = vmatprep.subr.msk.bf16.mxu0 %vm252_vm1, %v589_v8  ;;  %v709_v11 = vpop.permute.xlu0 %708 }
  0xa4   : > { %v711_v14 = vpop.permute.xlu1 %710  ;;  %v713_v20 = vsel %vm712_vm6, %v707_v9, %v709_v11 }
  0xa5   : > { %1603 = vmatmul.mubr.msk.bf16.vlgmr.msra.gmra.mxu1 %vm248_vm3, %v1536_v10  ;;  %v714_v17 = vsel %vm712_vm6, %v709_v11, %v711_v14  ;;  %v725_v21 = vsel %vm252_vm1, %v711_v14, 0  ;;  %v719_v23 = vsel %vm252_vm1, %v713_v20, 0 }
  0xa6   : > { %1607 = vmatpush3.bf16.msra.mxu1 %v600_v13  ;;  %1608 = vmatprep.mubr.msk.bf16.mxu1 %vm1811_vm0, %v1810_v3 }
  0xa7   : > { %v832_v16 = vpop.permute.xlu0 %831  ;;  %1612 = vmatprep.subr.bf16.mxu1 %v1810_v3 }
  0xa8   : > { %v834_v18 = vpop.permute.xlu1 %833 }
  0xa9   : > { %1538 = vmatmul.mubr.msk.bf16.vlgmr.msra.gmra.mxu0 %vm248_vm3, %v1536_v10  ;;  %v838_v28 = vsel %vm837_vm7, %v832_v16, %v834_v18 }
  0xaa   : > { %617 = vmatpush1.bf16.msra.mxu0 %v594_v15  ;;  %634 = vmatprep.mubr.bf16.mxu0 %v1812_v6  ;;  %v844_v31 = vsel %vm252_vm1, %v838_v28, 0 }
  0xab   : > { %1545 = vmatprep.subr.msk.bf16.mxu0 %vm252_vm1, %v714_v17  ;;  %v836_v22 = vpop.permute.xlu0 %835 }
  0xac   : > { %v957_v24 = vpop.permute.xlu1 %956  ;;  %v839_v25 = vsel %vm837_vm7, %v834_v18, %v836_v22  ;;  %v850_v29 = vsel %vm252_vm1, %v836_v22, 0 }
  0xad   : > { %1609 = vmatmul.mubr.msk.bf16.vlgmr.msra.gmra.mxu1 %vm248_vm3, %v1540_v19 }
  0xae   : > { %1613 = vmatpush3.bf16.msra.mxu1 %v725_v21  ;;  %1614 = vmatprep.mubr.msk.bf16.mxu1 %vm1811_vm0, %v1810_v3 }
  0xaf   : > { %1618 = vmatprep.subr.bf16.mxu1 %v1810_v3  ;;  %v959_v26 = vpop.permute.xlu0 %958 }
  0xb0   : > { %v961_v30 = vpop.permute.xlu1 %960  ;;  %v963_v36 = vsel %vm962_vm8, %v957_v24, %v959_v26 }
  0xb1   : > { %1542 = vmatmul.mubr.msk.bf16.vlgmr.msra.gmra.mxu0 %vm248_vm3, %v1540_v19  ;;  %v964_v33 = vsel %vm962_vm8, %v959_v26, %v961_v30  ;;  %v975_v37 = vsel %vm252_vm1, %v961_v30, 0  ;;  %v969_v39 = vsel %vm252_vm1, %v963_v36, 0 }
  0xb2   : > { %742 = vmatpush1.bf16.msra.mxu0 %v719_v23  ;;  %759 = vmatprep.mubr.bf16.mxu0 %v1812_v6 }
  0xb3   : > { %1549 = vmatprep.subr.msk.bf16.mxu0 %vm252_vm1, %v839_v25  ;;  %v1082_v32 = vpop.permute.xlu0 %1081 }
  0xb4   : > { %v1084_v34 = vpop.permute.xlu1 %1083 }
  0xb5   : > { %1615 = vmatmul.mubr.msk.bf16.vlgmr.msra.gmra.mxu1 %vm248_vm3, %v1544_v27  ;;  %v1088_v43 = vsel %vm1087_vm9, %v1082_v32, %v1084_v34 }
  0xb6   : > { %1619 = vmatpush3.bf16.msra.mxu1 %v850_v29  ;;  %1620 = vmatprep.mubr.msk.bf16.mxu1 %vm1811_vm0, %v1810_v3  ;;  %v1094_v47 = vsel %vm252_vm1, %v1088_v43, 0 }
  0xb7   : > { %1624 = vmatprep.subr.bf16.mxu1 %v1810_v3  ;;  %v1086_v38 = vpop.permute.xlu0 %1085 }
  0xb8   : > { %v1207_v40 = vpop.permute.xlu1 %1206  ;;  %v1089_v41 = vsel %vm1087_vm9, %v1084_v34, %v1086_v38  ;;  %v1100_v44 = vsel %vm252_vm1, %v1086_v38, 0 }
  0xb9   : > { %1546 = vmatmul.mubr.msk.bf16.vlgmr.msra.gmra.mxu0 %vm248_vm3, %v1544_v27 }
  0xba   : > { %867 = vmatpush1.bf16.msra.mxu0 %v844_v31  ;;  %884 = vmatprep.mubr.bf16.mxu0 %v1812_v6 }
  0xbb   : > { %1553 = vmatprep.subr.msk.bf16.mxu0 %vm252_vm1, %v964_v33  ;;  %v1209_v45 = vpop.permute.xlu0 %1208 }
  0xbc   : > { %v1211_v46 = vpop.permute.xlu1 %1210  ;;  %v1213_v50 = vsel %vm1212_vm10, %v1207_v40, %v1209_v45 }
  0xbd   : > { %1621 = vmatmul.mubr.msk.bf16.vlgmr.msra.gmra.mxu1 %vm248_vm3, %v1548_v35  ;;  %v1214_v48 = vsel %vm1212_vm10, %v1209_v45, %v1211_v46  ;;  %v1225_v51 = vsel %vm252_vm1, %v1211_v46, 0  ;;  %v1219_v52 = vsel %vm252_vm1, %v1213_v50, 0 }
  0xbe   : > { %1625 = vmatpush3.bf16.msra.mxu1 %v975_v37  ;;  %1626 = vmatprep.mubr.msk.bf16.mxu1 %vm1811_vm0, %v1810_v3 }
  0xbf   : > { %1630 = vmatprep.subr.bf16.mxu1 %v1810_v3 }
  0xc1   : > { %1550 = vmatmul.mubr.msk.bf16.vlgmr.msra.gmra.mxu0 %vm248_vm3, %v1548_v35 }
  0xc2   : > { %992 = vmatpush1.bf16.msra.mxu0 %v969_v39  ;;  %1009 = vmatprep.mubr.bf16.mxu0 %v1812_v6 }
  0xc3   : > { %1557 = vmatprep.subr.msk.bf16.mxu0 %vm252_vm1, %v1089_v41 }
  0xc5   : > { %1627 = vmatmul.mubr.msk.bf16.vlgmr.msra.gmra.mxu1 %vm248_vm3, %v1552_v42 }
  0xc6   : > { %1631 = vmatpush3.bf16.msra.mxu1 %v1100_v44  ;;  %1632 = vmatprep.mubr.msk.bf16.mxu1 %vm1811_vm0, %v1810_v3 }
  0xc7   : > { %1636 = vmatprep.subr.bf16.mxu1 %v1810_v3 }
  0xc9   : > { %1554 = vmatmul.mubr.msk.bf16.vlgmr.msra.gmra.mxu0 %vm248_vm3, %v1552_v42 }
  0xca   : > { %1117 = vmatpush1.bf16.msra.mxu0 %v1094_v47  ;;  %1134 = vmatprep.mubr.bf16.mxu0 %v1812_v6 }
  0xcb   : > { %1561 = vmatprep.subr.msk.bf16.mxu0 %vm252_vm1, %v1214_v48  ;;  %vm1354_vm1 = vcmask 917248  }
  0xcd   : > { %1633 = vmatmul.mubr.msk.bf16.vlgmr.msra.gmra.mxu1 %vm248_vm3, %v1556_v49 }
  0xce   : > { %1637 = vmatpush3.bf16.msra.mxu1 %v1225_v51  ;;  %1638 = vmatprep.mubr.msk.bf16.mxu1 %vm1811_vm0, %v1810_v3  ;;  %vm1349_vm0 = vcmask 786048  }
  0xd1   : > { %1558 = vmatmul.mubr.msk.bf16.vlgmr.msra.gmra.mxu0 %vm248_vm3, %v1556_v49 }
  0xd2   : > { %1242 = vmatpush1.bf16.msra.mxu0 %v1219_v52  ;;  %1259 = vmatprep.mubr.bf16.mxu0 %v1812_v6 }
  0xd5   : > { %1639 = vmatmul.mubr.msk.bf16.vlgmr.msra.gmra.mxu1 %vm248_vm3, %v1560_v53 }
  0xd9   : > { %1562 = vmatmul.mubr.msk.bf16.vlgmr.msra.gmra.mxu0 %vm248_vm3, %v1560_v53  ;;  %vm1364_vm3 = vcmask 1048448  }
 0x155   : > { %v337_v54 = vpop.f32.mrf.mxu1 }
 0x157   : > { %v1592_v55 = vpop.f32.mrf.mxu1 }
 0x159   : > { %v296_v56 = vpop.f32.mrf.mxu0  ;;  %v340_v57 = vpop.f32.mrf.mxu1 }
 0x15b   : > { %v298_v58 = vpop.f32.mrf.mxu0  ;;  %v1593_v59 = vpop.f32.mrf.mxu1 }
 0x15d   : > { %v300_v3 = vpop.f32.mrf.mxu0  ;;  %v430_v60 = vpop.f32.mrf.mxu1 }
 0x15e   : > { %v431_v40 = vadd.f32 %v430_v60, %v337_v54 }
 0x15f   : > { %v301_v61 = vpop.f32.mrf.mxu0  ;;  %v1598_v62 = vpop.f32.mrf.mxu1 }
 0x161   : > { %v389_v63 = vpop.f32.mrf.mxu0  ;;  %v433_v6 = vpop.f32.mrf.mxu1 }
 0x162   : > { %v390_v45 = vadd.f32 %v389_v63, %v296_v56 }
 0x163   : > { %v391_v0 = vpop.f32.mrf.mxu0  ;;  %v1599_v1 = vpop.f32.mrf.mxu1 }
 0x164   : > { %v392_v49 = vadd.f32 %v391_v0, %v298_v58 }
 0x165   : > { %v393_v2 = vpop.f32.mrf.mxu0  ;;  %v552_v4 = vpop.f32.mrf.mxu1 }
 0x166   : > { %v560_v43 = vadd.f32 %v552_v4, %v431_v40 }
 0x167   : > { %v394_v5 = vpop.f32.mrf.mxu0  ;;  %v1604_v7 = vpop.f32.mrf.mxu1 }
 0x169   : > { %v511_v8 = vpop.f32.mrf.mxu0  ;;  %v555_v9 = vpop.f32.mrf.mxu1 }
 0x16a   : > { %v558_v50 = vadd.f32 %v511_v8, %v390_v45  ;;  %v1315_v8 = vpop.permute.xlu0 %1314 }
 0x16b   : > { %v513_v10 = vpop.f32.mrf.mxu0  ;;  %v1605_v11 = vpop.f32.mrf.mxu1 }
 0x16c   : > { %v559_v55 = vadd.f32 %v513_v10, %v392_v49 }
 0x16d   : > { %v515_v12 = vpop.f32.mrf.mxu0  ;;  %v677_v13 = vpop.f32.mrf.mxu1 }
 0x16e   : > { %v685_v47 = vadd.f32 %v677_v13, %v560_v43 }
 0x16f   : > { %v516_v14 = vpop.f32.mrf.mxu0  ;;  %v1610_v15 = vpop.f32.mrf.mxu1 }
 0x171   : > { %v636_v16 = vpop.f32.mrf.mxu0  ;;  %v680_v17 = vpop.f32.mrf.mxu1 }
 0x172   : > { %v683_v57 = vadd.f32 %v636_v16, %v558_v50 }
 0x173   : > { %v638_v18 = vpop.f32.mrf.mxu0  ;;  %v1611_v19 = vpop.f32.mrf.mxu1 }
 0x174   : > { %v684_v62 = vadd.f32 %v638_v18, %v559_v55 }
 0x175   : > { %v640_v20 = vpop.f32.mrf.mxu0  ;;  %v802_v21 = vpop.f32.mrf.mxu1 }
 0x176   : > { %v810_v52 = vadd.f32 %v802_v21, %v685_v47 }
 0x177   : > { %v641_v22 = vpop.f32.mrf.mxu0  ;;  %v1616_v23 = vpop.f32.mrf.mxu1 }
 0x179   : > { %v761_v24 = vpop.f32.mrf.mxu0  ;;  %v805_v25 = vpop.f32.mrf.mxu1 }
 0x17a   : > { %v808_v54 = vadd.f32 %v761_v24, %v683_v57 }
 0x17b   : > { %v763_v26 = vpop.f32.mrf.mxu0  ;;  %v1617_v27 = vpop.f32.mrf.mxu1 }
 0x17c   : > { %v809_v56 = vadd.f32 %v763_v26, %v684_v62 }
 0x17d   : > { %v765_v28 = vpop.f32.mrf.mxu0  ;;  %v927_v29 = vpop.f32.mrf.mxu1 }
 0x17e   : > { %v935_v3 = vadd.f32 %v927_v29, %v810_v52 }
 0x17f   : > { %v766_v30 = vpop.f32.mrf.mxu0  ;;  %v1622_v31 = vpop.f32.mrf.mxu1 }
 0x181   : > { %v886_v32 = vpop.f32.mrf.mxu0  ;;  %v930_v33 = vpop.f32.mrf.mxu1 }
 0x182   : > { %v933_v63 = vadd.f32 %v886_v32, %v808_v54 }
 0x183   : > { %v888_v34 = vpop.f32.mrf.mxu0  ;;  %v1623_v35 = vpop.f32.mrf.mxu1 }
 0x184   : > { %v934_v0 = vadd.f32 %v888_v34, %v809_v56 }
 0x185   : > { %v890_v36 = vpop.f32.mrf.mxu0  ;;  %v1052_v37 = vpop.f32.mrf.mxu1 }
 0x186   : > { %v1060_v6 = vadd.f32 %v1052_v37, %v935_v3 }
 0x187   : > { %v891_v38 = vpop.f32.mrf.mxu0  ;;  %v1628_v39 = vpop.f32.mrf.mxu1 }
 0x189   : > { %v1011_v41 = vpop.f32.mrf.mxu0  ;;  %v1055_v42 = vpop.f32.mrf.mxu1 }
 0x18a   : > { %v1058_v5 = vadd.f32 %v1011_v41, %v933_v63 }
 0x18b   : > { %v1013_v44 = vpop.f32.mrf.mxu0  ;;  %v1629_v46 = vpop.f32.mrf.mxu1 }
 0x18c   : > { %v1059_v11 = vadd.f32 %v1013_v44, %v934_v0 }
 0x18d   : > { %v1015_v48 = vpop.f32.mrf.mxu0  ;;  %v1177_v51 = vpop.f32.mrf.mxu1 }
 0x18e   : > { %v1185_v4 = vadd.f32 %v1177_v51, %v1060_v6 }
 0x18f   : > { %v1016_v53 = vpop.f32.mrf.mxu0  ;;  %v1634_v59 = vpop.f32.mrf.mxu1 }
 0x191   : > { %v1136_v61 = vpop.f32.mrf.mxu0  ;;  %v1180_v60 = vpop.f32.mrf.mxu1 }
 0x192   : > { %v1183_v12 = vadd.f32 %v1136_v61, %v1058_v5 }
 0x193   : > { %v1138_v1 = vpop.f32.mrf.mxu0  ;;  %v1635_v2 = vpop.f32.mrf.mxu1 }
 0x194   : > { %v1184_v16 = vadd.f32 %v1138_v1, %v1059_v11 }
 0x195   : > { %v1140_v58 = vpop.f32.mrf.mxu0  ;;  %v1302_v7 = vpop.f32.mrf.mxu1 }
 0x196   : > { %v1310_v9 = vadd.f32 %v1302_v7, %v1185_v4 }
 0x197   : > { %v1141_v10 = vpop.f32.mrf.mxu0  ;;  %v1640_v13 = vpop.f32.mrf.mxu1 }
 0x198   : > { %v1319_v14 = vadd.f32 %v1315_v8, %v1310_v9 }
 0x199   : > { %v1261_v15 = vpop.f32.mrf.mxu0  ;;  %v1305_v18 = vpop.f32.mrf.mxu1 }
 0x19a   : > { %v1308_v17 = vadd.f32 %v1261_v15, %v1183_v12  ;;  %v1322_v20 = vmax.f32 %v1319_v14, 0.0 }
 0x19b   : > { %v1263_v19 = vpop.f32.mrf.mxu0  ;;  %v1641_v23 = vpop.f32.mrf.mxu1 }
 0x19c   : > { %v1317_v21 = vadd.f32 %v1315_v8, %v1308_v17  ;;  %v1309_v22 = vadd.f32 %v1263_v19, %v1184_v16  ;;  %1393 = vrot.lane.b32.xlu0 %v1322_v20, %s1821_s30 }
 0x19d   : > { %v1265_v24 = vpop.f32.mrf.mxu0 }
 0x19e   : > { %v1320_v25 = vmax.f32 %v1317_v21, 0.0  ;;  %v1318_v26 = vadd.f32 %v1315_v8, %v1309_v22 }
 0x19f   : > { %v1266_v27 = vpop.f32.mrf.mxu0 }
 0x1a0   : > { %1326 = vrot.lane.b32.xlu1 %v1320_v25, %s1814_s5  ;;  %1324 = vst.msk [vmem:[%s2084_s4] sm:$0xff] %vm1323_vm11, %v1320_v25  ;;  %1357 = vrot.lane.b32.xlu0 %v1320_v25, %s1822_s7  ;;  %v1321_v28 = vmax.f32 %v1318_v26, 0.0  ;;  %s1827_s5 = smov 118  }
 0x1a4   : > { %1331 = vrot.lane.b32.xlu1 %v1320_v25, %s1823_s9  ;;  %1370 = vrot.lane.b32.xlu0 %v1321_v28, %s1815_s6  ;;  %s1832_s6 = smov 98   ;;  %s1404_s9 = scalar_lea.sflag [#allocation3], %s201_s28 }
 0x1a8   : > { %1336 = vrot.lane.b32.xlu1 %v1320_v25, %s1824_s10  ;;  %1374 = vrot.lane.b32.xlu0 %v1321_v28, %s1817_s8  ;;  %s1569_s8 = sshll.u32 %s1799_s15, 8  ;;  %s1731_s15 = scalar_lea.vmem %s1421_s27, 256 }
 0x1a9   : > { %p1732_p12 = scmp.ne.s32.totalorder %s1421_s27, %s1731_s15  ;;  %s1833_s10 = smov [#allocation2]  }
 0x1ab   : > { %p1733_p13 = pnand %p1732_p12, %p1894_p4 }
 0x1ac   : > { %1341 = vrot.lane.b32.xlu1 %v1320_v25, %s1825_s11  ;;  %1378 = vrot.lane.b32.xlu0 %v1321_v28, %s1826_s18  ;;  %s1735_s11 = sshll.u32 %s1833_s10, 4  ;;  %s1736_s11 = int_to_ptr.vmem [resolvable:$false] %s1735_s11 }
 0x1ad   : > { %p1734_p0 = pneg %p1733_p13  ;;  %s1737_s18 = scalar_lea.vmem %s1736_s11, 512 }
 0x1ae   : > { %p1738_p1 = scmp.lt.s32.totalorder %s1421_s27, %s1736_s11  ;;  %p1739_p2 = scmp.lt.s32.totalorder %s1737_s18, %s1731_s15 }
 0x1b0   : > { %1346 = vrot.lane.b32.xlu1 %v1320_v25, %s1827_s5  ;;  %1382 = vrot.lane.b32.xlu0 %v1321_v28, %s1828_s19  ;;  %p1740_p3 = por %p1739_p2, %p1738_p1 }
 0x1b2   : > { %p1741_p5 = pnand %p1740_p3, %p1734_p0 }
 0x1b4   : > { %1351 = vrot.lane.b32.xlu1 %v1320_v25, %s1829_s21  ;;  %1386 = vrot.lane.b32.xlu0 %v1321_v28, %s1830_s23 }
 0x1b8   : > { %1366 = vrot.lane.b32.xlu1 %v1321_v28, %s1831_s26  ;;  %1399 = vrot.lane.b32.xlu0 %v1322_v20, %s1832_s6 }
 0x1bc   : > { %1391 = vrot.lane.b32.xlu1 %v1321_v28, %s1821_s30 }
 0x1c0   : > { %1359 = vrot.lane.b32.xlu1 %v1321_v28, %s1822_s7  ;;  %s2123_s7 = scalar_lea.hbm %s2169_s3, %s1569_s8 }
 0x20e   : > { %v1394_v29 = vpop.permute.xlu0 %1393 }
 0x212   : > { %v1327_v30 = vpop.permute.xlu1 %1326  ;;  %v1358_v31 = vpop.permute.xlu0 %1357 }
 0x213   : > { %1330 = vst.msk [vmem:[%s2084_s4] sm:$0xff] %vm1329_vm12, %v1327_v30 }
 0x216   : > { %v1332_v32 = vpop.permute.xlu1 %1331  ;;  %v1371_v33 = vpop.permute.xlu0 %1370 }
 0x217   : > { %1335 = vst.msk [vmem:[%s2084_s4] sm:$0xff] %vm1334_vm13, %v1332_v32 }
 0x21a   : > { %v1337_v34 = vpop.permute.xlu1 %1336  ;;  %v1375_v35 = vpop.permute.xlu0 %1374 }
 0x21b   : > { %1340 = vst.msk [vmem:[%s2084_s4] sm:$0xff] %vm1339_vm14, %v1337_v34 }
 0x21e   : > { %v1342_v36 = vpop.permute.xlu1 %1341  ;;  %v1379_v37 = vpop.permute.xlu0 %1378 }
 0x21f   : > { %1345 = vst.msk [vmem:[%s2084_s4] sm:$0xff] %vm1344_vm15, %v1342_v36 }
 0x222   : > { %v1347_v38 = vpop.permute.xlu1 %1346  ;;  %v1383_v39 = vpop.permute.xlu0 %1382 }
 0x223   : > { %1350 = vst.msk [vmem:[%s2084_s4] sm:$0xff] %vm1349_vm0, %v1347_v38 }
 0x226   : > { %v1352_v40 = vpop.permute.xlu1 %1351  ;;  %v1387_v42 = vpop.permute.xlu0 %1386 }
 0x227   : > { %1355 = vst.msk [vmem:[%s2084_s4] sm:$0xff] %vm1354_vm1, %v1352_v40 }
 0x22a   : > { %v1367_v41 = vpop.permute.xlu1 %1366  ;;  %v1400_v45 = vpop.permute.xlu0 %1399 }
 0x22b   : > { %1369 = vst.msk [vmem:[%s2084_s4 + $0x8] sm:$0xff] %vm1323_vm11, %v1367_v41 }
 0x22c   : > { %1373 = vst.msk [vmem:[%s2084_s4 + $0x8] sm:$0xff] %vm1329_vm12, %v1371_v33 }
 0x22d   : > { %1377 = vst.msk [vmem:[%s2084_s4 + $0x8] sm:$0xff] %vm1334_vm13, %v1375_v35 }
 0x22e   : > { %1381 = vst.msk [vmem:[%s2084_s4 + $0x8] sm:$0xff] %vm1339_vm14, %v1379_v37  ;;  %v1392_v43 = vpop.permute.xlu1 %1391 }
 0x22f   : > { %1385 = vst.msk [vmem:[%s2084_s4 + $0x8] sm:$0xff] %vm1344_vm15, %v1383_v39  ;;  %v1396_v44 = vsel %vm1395_vm2, %v1392_v43, %v1394_v29 }
 0x230   : > { %1389 = vst.msk [vmem:[%s2084_s4 + $0x8] sm:$0xff] %vm1349_vm0, %v1387_v42 }
 0x231   : > { %1398 = vst.msk [vmem:[%s2084_s4 + $0x8] sm:$0xff] %vm1354_vm1, %v1396_v44 }
 0x232   : > { %v1360_v46 = vpop.permute.xlu1 %1359  ;;  %1402 = vst.msk [vmem:[%s2084_s4 + $0x8] sm:$0xff] %vm1364_vm3, %v1400_v45 }
 0x233   : > { %v1362_v47 = vsel %vm1361_vm4, %v1358_v31, %v1360_v46 }
 0x234   : > { %1365 = vst.msk [vmem:[%s2084_s4] sm:$0xff] %vm1364_vm3, %v1362_v47 }
 0x235   : > { %1744 = shalt.err (!%p1741_p5)
}
 0x236   : > { %s1745_s4 = scalar_lea.hbm %s2123_s7, 256  ;;  %s1749_s19 = scalar_lea.hbm %s2169_s3, 512 }
 0x237   : > { %p1746_p6 = scmp.ne.s32.totalorder %s2123_s7, %s1745_s4  ;;  %p1750_p10 = scmp.lt.s32.totalorder %s2123_s7, %s2169_s3 }
 0x238   : > { %p1751_p11 = scmp.lt.s32.totalorder %s1749_s19, %s1745_s4 }
 0x239   : > { %p1747_p7 = pnand %p1746_p6, %p1894_p4 }
 0x23a   : > { %p1752_p12 = por %p1751_p11, %p1750_p10 }
 0x23b   : > { %p1748_p9 = pneg %p1747_p7 }
 0x23d   : > { %p1753_p13 = pnand %p1752_p12, %p1748_p9 }
 0x23f   : > { %1756 = shalt.err (!%p1753_p13)
}
 0x240   : > { %1643 = dma.vmem_to_hbm [thread:$0]  (%p1894_p4), %s1421_s27, 256, %s2123_s7, %s1404_s9  }
 0x241 PF: > { %p1649_p0 = scmp.ge.s32.totalorder %s1807_s17, 2  ;;  %s1432_s26 = sand.u32 1, %s1787_s12  }
 0x242   : > { %s1433_s6 = scalar_lea.sflag [#allocation3], %s1432_s26 }
 0x243   : > { %p1646_p1 = pnand %p1649_p0, %p1901_p8 }
 0x245   : > { %p1647_p2 = pneg %p1646_p1 }
 0x247   : > { %1782 = dma.done.wait (%p1647_p2), %s1433_s6, 256  }
 0x248   : > { %1784 = vsyncadd (%p1647_p2), %s1433_s6, 4294967040  ;;  %s16_s17 = sadd.s32 1, %s1807_s17   ;;  %s2172_s12 = smov %s1791_s13 }
 0x249   : > { %p13_p3 = scmp.ge.s32.totalorder %s16_s17, 4   ;;  %s2173_s13 = smov %s1795_s14 }
 0x24a   : > { %s2174_s14 = smov %s1907_s25  ;;  %s2175_s15 = smov %s1803_s16 }
 0x24b   : > { %s2176_s16 = smov %s2178_s20  ;;  %15 = sbr.rel (!%p13_p3) target bundleno = 4 (0x4), region = 81 }
 0x250   :  { %1438 = vsyncpa [#allocation3], 1 }
 0x251   :  { %1440 = vsyncpa [#allocation3 + $0x1], 1 }

</bundles_post_ra>
